<compile_context>
chip_gen: v5e
topology: v5e:2x2
jax: 0.10.0
libtpu: 0.0.40
codegen_flags: <defaults>
</compile_context>

<pallas_src>
import functools

import jax
import jax.numpy as jnp
from jax.experimental import pallas as pl
from jax.experimental.pallas import tpu as pltpu


def _round_up(v, m):
    return (v + m - 1) // m * m


def _log_softmax(logits):
    # Numerically-stable log-softmax along the last axis (matches
    # nn.LogSoftmax() on a 2-D input, implicit dim=1).
    m = jnp.max(logits, axis=-1, keepdims=True)
    shifted = logits - m
    lse = jnp.log(jnp.sum(jnp.exp(shifted), axis=-1, keepdims=True))
    return shifted - lse


def mdan_kernel(
    # scalar prefetch (domain index; selection happens in the index_maps)
    i_ref,
    # batch tile of inputs (bf16)
    x_ref,
    # feature extractor
    fw1_ref, fb1_ref, fw2_ref, fb2_ref,
    # fused stage-1 classifier weights:  [lw1 | dw1_i], [lb1 | db1_i]
    w1c_ref, b1c_ref,
    # label classifier (stages 2, 3)
    lw2_ref, lb2_ref, lw3_ref, lb3_ref,
    # selected domain classifier (stages 2, 3)
    dw2_ref, db2_ref, dw3_ref, db3_ref,
    # lane-dense output slab: [label log-probs | domain log-probs | zero pad]
    out_ref,
):
    del i_ref  # only used by the BlockSpec index_maps
    f32 = jnp.float32
    bf16 = jnp.bfloat16

    cls_hid = lw2_ref.shape[-1]
    class_num = lw3_ref.shape[-1]
    out_w = out_ref.shape[-1]

    x = x_ref[...]  # (TILE_B, in_dim) bf16

    # ---- feature extractor: Linear -> Tanh -> Linear -> Sigmoid ----
    h = jnp.tanh(
        jnp.dot(x, fw1_ref[...], preferred_element_type=f32) + fb1_ref[...]
    )
    feature = jax.nn.sigmoid(
        jnp.dot(h.astype(bf16), fw2_ref[...], preferred_element_type=f32)
        + fb2_ref[...]
    )
    # Gradient reversal is identity in forward.
    feature_b = feature.astype(bf16)

    # ---- fused stage-1: [label-layer1 | domain-layer1], one MXU dot ----
    ld = jnp.tanh(
        jnp.dot(feature_b, w1c_ref[...], preferred_element_type=f32)
        + b1c_ref[...]
    )
    l = ld[:, :cls_hid]
    d = ld[:, cls_hid:]

    # ---- label classifier: Tanh(Linear) -> Linear -> LogSoftmax ----
    l = jnp.tanh(
        jnp.dot(l.astype(bf16), lw2_ref[...], preferred_element_type=f32)
        + lb2_ref[...]
    )
    label_logits = (
        jnp.dot(l.astype(bf16), lw3_ref[...], preferred_element_type=f32)
        + lb3_ref[...]
    )

    # ---- domain classifier i: Tanh(Linear) -> Linear -> LogSoftmax ----
    d = jnp.tanh(
        jnp.dot(d.astype(bf16), dw2_ref[...], preferred_element_type=f32)
        + db2_ref[...]
    )
    domain_logits = (
        jnp.dot(d.astype(bf16), dw3_ref[...], preferred_element_type=f32)
        + db3_ref[...]
    )

    label_lp = _log_softmax(label_logits)    # (TILE_B, class_num) f32
    domain_lp = _log_softmax(domain_logits)  # (TILE_B, 2) f32

    # Lane-dense packed output: one full-width (unmasked) store per tile.
    pad = out_w - class_num - 2
    parts = [label_lp, domain_lp]
    if pad > 0:
        parts.append(jnp.zeros((label_lp.shape[0], pad), f32))
    out_ref[...] = jnp.concatenate(parts, axis=-1)


def init_mdan_params(key, in_dim, num_domains, fea_hid_dim, cls_hid_dim, class_num):
    """Deterministic synthetic parameter init (weights as [in, out], biases [1, out], f32)."""
    def linear(k, din, dout):
        kw, kb = jax.random.split(k)
        w = jax.random.normal(kw, (din, dout), jnp.float32) * 0.1
        b = jax.random.normal(kb, (1, dout), jnp.float32) * 0.1
        return w, b

    keys = jax.random.split(key, 5 + 3 * num_domains)
    params = {}
    # feature extractor
    params["fw1"], params["fb1"] = linear(keys[0], in_dim, fea_hid_dim)
    params["fw2"], params["fb2"] = linear(keys[1], fea_hid_dim, fea_hid_dim)
    # label classifier
    params["lw1"], params["lb1"] = linear(keys[2], fea_hid_dim, cls_hid_dim)
    params["lw2"], params["lb2"] = linear(keys[3], cls_hid_dim, cls_hid_dim)
    params["lw3"], params["lb3"] = linear(keys[4], cls_hid_dim, class_num)
    # domain classifiers (stacked along leading axis: one per domain)
    dw1, db1, dw2, db2, dw3, db3 = [], [], [], [], [], []
    for dd in range(num_domains):
        w1, b1 = linear(keys[5 + 3 * dd + 0], fea_hid_dim, cls_hid_dim)
        w2, b2 = linear(keys[5 + 3 * dd + 1], cls_hid_dim, cls_hid_dim)
        w3, b3 = linear(keys[5 + 3 * dd + 2], cls_hid_dim, 2)
        dw1.append(w1); db1.append(b1)
        dw2.append(w2); db2.append(b2)
        dw3.append(w3); db3.append(b3)
    params["dw1"] = jnp.stack(dw1); params["db1"] = jnp.stack(db1)
    params["dw2"] = jnp.stack(dw2); params["db2"] = jnp.stack(db2)
    params["dw3"] = jnp.stack(dw3); params["db3"] = jnp.stack(db3)
    return params


def prepare_params(params):
    """One-time param repack for the kernel: bf16 weights, f32 biases, and the
    fused stage-1 weight [lw1 | dw1_d] / bias [lb1 | db1_d] stacked per domain."""
    bf16 = jnp.bfloat16
    nd = params["dw1"].shape[0]
    w1c = jnp.concatenate(
        [jnp.broadcast_to(params["lw1"][None], (nd,) + params["lw1"].shape),
         params["dw1"]],
        axis=-1,
    ).astype(bf16)                                    # (nd, fea_hid, 2*cls_hid)
    b1c = jnp.concatenate(
        [jnp.broadcast_to(params["lb1"][None], (nd,) + params["lb1"].shape),
         params["db1"]],
        axis=-1,
    ).astype(jnp.float32)                             # (nd, 1, 2*cls_hid)
    return {
        "fw1": params["fw1"].astype(bf16), "fb1": params["fb1"],
        "fw2": params["fw2"].astype(bf16), "fb2": params["fb2"],
        "w1c": w1c, "b1c": b1c,
        "lw2": params["lw2"].astype(bf16), "lb2": params["lb2"],
        "lw3": params["lw3"].astype(bf16), "lb3": params["lb3"],
        "dw2": params["dw2"].astype(bf16), "db2": params["db2"],
        "dw3": params["dw3"].astype(bf16), "db3": params["db3"],
    }


@functools.partial(jax.jit, static_argnames=("tile_b",))
def mdan_forward(x, prep, i, *, tile_b=256):
    """Runs MDAN.forward(x, i) with the Pallas kernel.

    tile_b: batch-tile rows per grid step.  Default 256 (fills the v6e/v7x MXU
    M dimension; a multiple of 128 also saturates v5e).  For very large tiles
    on v7x (64 MiB physical VMEM) add
    compiler_params=pltpu.CompilerParams(vmem_limit_bytes=...) accordingly.
    """
    B, in_dim = x.shape
    fea_hid = prep["fw1"].shape[-1]
    cls_hid = prep["lw2"].shape[-1]
    two_cls = prep["w1c"].shape[-1]
    class_num = prep["lw3"].shape[-1]
    out_w = max(128, _round_up(class_num + 2, 128))  # lane-dense output slab

    # Batch tiling: multiple of 8 sublanes; pad batch to a whole number of tiles.
    tb = min(tile_b, _round_up(B, 8))
    b_pad = _round_up(B, tb)
    n_tiles = b_pad // tb

    xb = x.astype(jnp.bfloat16)
    if b_pad != B:
        xb = jnp.pad(xb, ((0, b_pad - B), (0, 0)))

    i_arr = jnp.full((1,), i, jnp.int32)  # scalar-prefetch domain index

    const = lambda b, i_ref: (0, 0)            # resident weights / biases
    sel3 = lambda b, i_ref: (i_ref[0], 0, 0)   # select domain i, squeeze lead dim

    grid_spec = pltpu.PrefetchScalarGridSpec(
        num_scalar_prefetch=1,
        grid=(n_tiles,),
        in_specs=[
            pl.BlockSpec((tb, in_dim), lambda b, i_ref: (b, 0)),        # x tile
            pl.BlockSpec((in_dim, fea_hid), const),                     # fw1
            pl.BlockSpec((1, fea_hid), const),                          # fb1
            pl.BlockSpec((fea_hid, fea_hid), const),                    # fw2
            pl.BlockSpec((1, fea_hid), const),                          # fb2
            pl.BlockSpec((None, fea_hid, two_cls), sel3),               # w1c[i]
            pl.BlockSpec((None, 1, two_cls), sel3),                     # b1c[i]
            pl.BlockSpec((cls_hid, cls_hid), const),                    # lw2
            pl.BlockSpec((1, cls_hid), const),                          # lb2
            pl.BlockSpec((cls_hid, class_num), const),                  # lw3
            pl.BlockSpec((1, class_num), const),                        # lb3
            pl.BlockSpec((None, cls_hid, cls_hid), sel3),               # dw2[i]
            pl.BlockSpec((None, 1, cls_hid), sel3),                     # db2[i]
            pl.BlockSpec((None, cls_hid, 2), sel3),                     # dw3[i]
            pl.BlockSpec((None, 1, 2), sel3),                           # db3[i]
        ],
        out_specs=pl.BlockSpec((tb, out_w), lambda b, i_ref: (b, 0)),
    )

    out = pl.pallas_call(
        mdan_kernel,
        out_shape=jax.ShapeDtypeStruct((b_pad, out_w), jnp.float32),
        grid_spec=grid_spec,
        compiler_params=pltpu.CompilerParams(
            dimension_semantics=("parallel",),  # megacore: split batch tiles on v7x
        ),
    )(
        i_arr, xb,
        prep["fw1"], prep["fb1"], prep["fw2"], prep["fb2"],
        prep["w1c"], prep["b1c"],
        prep["lw2"], prep["lb2"], prep["lw3"], prep["lb3"],
        prep["dw2"], prep["db2"], prep["dw3"], prep["db3"],
    )

    label_pred = out[:B, :class_num]
    domain_pred = out[:B, class_num:class_num + 2]
    return label_pred, domain_pred


def mdan_reference(x, params, i, bf16_matmul=False):
    """Pure-JAX reference (mirrors the PyTorch forward).  With bf16_matmul=True
    it applies the same bf16-input / f32-accumulate rounding as the kernel."""
    if bf16_matmul:
        cast = lambda a: a.astype(jnp.bfloat16)
    else:
        cast = lambda a: a

    def lin(a, w, b):
        return jnp.dot(cast(a), cast(w), preferred_element_type=jnp.float32) + b

    h = jnp.tanh(lin(x, params["fw1"], params["fb1"]))
    feat = jax.nn.sigmoid(lin(h, params["fw2"], params["fb2"]))
    l = jnp.tanh(lin(feat, params["lw1"], params["lb1"]))
    l = jnp.tanh(lin(l, params["lw2"], params["lb2"]))
    label = jax.nn.log_softmax(lin(l, params["lw3"], params["lb3"]), axis=-1)
    d = jnp.tanh(lin(feat, params["dw1"][i], params["db1"][i]))
    d = jnp.tanh(lin(d, params["dw2"][i], params["db2"][i]))
    domain = jax.nn.log_softmax(lin(d, params["dw3"][i], params["db3"][i]), axis=-1)
    return label, domain


if __name__ == "__main__":
    # Small, forward-consistent shapes.  batch=40 with tile_b=16 exercises the
    # batch grid (3 tiles) and the zero-padding path while staying tiny.
    batch = 40
    in_dim = 32
    num_domains = 3
    fea_hid_dim = 32
    cls_hid_dim = 32
    class_num = 4
    alpha = 1.0  # only affects backward (gradient reversal); unused in forward
    domain_idx = 1

    key = jax.random.PRNGKey(0)
    kx, kp = jax.random.split(key)
    x = jax.random.normal(kx, (batch, in_dim), jnp.float32)
    params = init_mdan_params(kp, in_dim, num_domains, fea_hid_dim, cls_hid_dim, class_num)
    prep = prepare_params(params)

    label_pred, domain_pred = mdan_forward(x, prep, domain_idx, tile_b=16)
    label_pred = jax.block_until_ready(label_pred)
    domain_pred = jax.block_until_ready(domain_pred)

    assert label_pred.shape == (batch, class_num)
    assert domain_pred.shape == (batch, 2)

    # Tight check against a reference that applies the same bf16 matmul rounding.
    label_bf, domain_bf = mdan_reference(x, params, domain_idx, bf16_matmul=True)
    assert jnp.allclose(label_pred, label_bf, atol=2e-3, rtol=2e-3)
    assert jnp.allclose(domain_pred, domain_bf, atol=2e-3, rtol=2e-3)

    # Loose check against the pure-f32 reference (bf16 matmul error only).
    label_f32, domain_f32 = mdan_reference(x, params, domain_idx, bf16_matmul=False)
    assert jnp.allclose(label_pred, label_f32, atol=5e-2, rtol=5e-2)
    assert jnp.allclose(domain_pred, domain_f32, atol=5e-2, rtol=5e-2)

    # log-softmax rows must sum (in prob space) to ~1
    assert jnp.allclose(jnp.exp(label_pred).sum(-1), 1.0, atol=1e-4)
    assert jnp.allclose(jnp.exp(domain_pred).sum(-1), 1.0, atol=1e-4)

    print("KERNEL_OK")
</pallas_src>

<mosaic_0001>
module attributes {stable_mosaic.version = 11 : i64} {
  func.func @mdan_kernel(%arg0: i32, %arg1: memref<1xi32, #tpu.memory_space<smem>>, %arg2: memref<16x32xbf16, #tpu.memory_space<vmem>>, %arg3: memref<32x32xbf16, #tpu.memory_space<vmem>>, %arg4: memref<1x32xf32, #tpu.memory_space<vmem>>, %arg5: memref<32x32xbf16, #tpu.memory_space<vmem>>, %arg6: memref<1x32xf32, #tpu.memory_space<vmem>>, %arg7: memref<1x32x64xbf16, #tpu.memory_space<vmem>>, %arg8: memref<1x1x64xf32, #tpu.memory_space<vmem>>, %arg9: memref<32x32xbf16, #tpu.memory_space<vmem>>, %arg10: memref<1x32xf32, #tpu.memory_space<vmem>>, %arg11: memref<32x4xbf16, #tpu.memory_space<vmem>>, %arg12: memref<1x4xf32, #tpu.memory_space<vmem>>, %arg13: memref<1x32x32xbf16, #tpu.memory_space<vmem>>, %arg14: memref<1x1x32xf32, #tpu.memory_space<vmem>>, %arg15: memref<1x32x2xbf16, #tpu.memory_space<vmem>>, %arg16: memref<1x1x2xf32, #tpu.memory_space<vmem>>, %arg17: memref<16x128xf32, #tpu.memory_space<vmem>>) attributes {dimension_semantics = [#tpu.dimension_semantics<parallel>], iteration_bounds = array<i64: 3>, scalar_prefetch = 1 : i64, scratch_operands = 0 : i64, tpu.core_type = #tpu.core_type<tc>, window_params = [{transform_indices = @transform_0, window_bounds = array<i64: 16, 32>}, {pipeline_mode = #tpu.pipeline_mode<synchronous>, transform_indices = @transform_1, window_bounds = array<i64: 32, 32>}, {pipeline_mode = #tpu.pipeline_mode<synchronous>, transform_indices = @transform_2, window_bounds = array<i64: 1, 32>}, {pipeline_mode = #tpu.pipeline_mode<synchronous>, transform_indices = @transform_3, window_bounds = array<i64: 32, 32>}, {pipeline_mode = #tpu.pipeline_mode<synchronous>, transform_indices = @transform_4, window_bounds = array<i64: 1, 32>}, {transform_indices = @transform_5, window_bounds = array<i64: 1, 32, 64>}, {transform_indices = @transform_6, window_bounds = array<i64: 1, 1, 64>}, {pipeline_mode = #tpu.pipeline_mode<synchronous>, transform_indices = @transform_7, window_bounds = array<i64: 32, 32>}, {pipeline_mode = #tpu.pipeline_mode<synchronous>, transform_indices = @transform_8, window_bounds = array<i64: 1, 32>}, {pipeline_mode = #tpu.pipeline_mode<synchronous>, transform_indices = @transform_9, window_bounds = array<i64: 32, 4>}, {pipeline_mode = #tpu.pipeline_mode<synchronous>, transform_indices = @transform_10, window_bounds = array<i64: 1, 4>}, {transform_indices = @transform_11, window_bounds = array<i64: 1, 32, 32>}, {transform_indices = @transform_12, window_bounds = array<i64: 1, 1, 32>}, {transform_indices = @transform_13, window_bounds = array<i64: 1, 32, 2>}, {transform_indices = @transform_14, window_bounds = array<i64: 1, 1, 2>}, {transform_indices = @transform_15, window_bounds = array<i64: 16, 128>}]} {
    %c0 = arith.constant 0 : index
    %c0_0 = arith.constant 0 : index
    %0 = vector.load %arg2[%c0, %c0_0] : memref<16x32xbf16, #tpu.memory_space<vmem>>, vector<16x32xbf16>
    %c0_1 = arith.constant 0 : index
    %c0_2 = arith.constant 0 : index
    %1 = vector.load %arg3[%c0_1, %c0_2] : memref<32x32xbf16, #tpu.memory_space<vmem>>, vector<32x32xbf16>
    %cst = arith.constant dense<0.000000e+00> : vector<16x32xf32>
    %2 = tpu.matmul %0, %1, %cst {dimension_numbers = #tpu.dot_dimension_numbers<[1], [0], [0], [1], [0, 0, 1, 1], [], []>} : vector<16x32xbf16>, vector<32x32xbf16>, vector<16x32xf32> -> vector<16x32xf32>
    %c0_3 = arith.constant 0 : index
    %c0_4 = arith.constant 0 : index
    %3 = vector.load %arg4[%c0_3, %c0_4] : memref<1x32xf32, #tpu.memory_space<vmem>>, vector<1x32xf32>
    %4 = vector.broadcast %3 : vector<1x32xf32> to vector<16x32xf32>
    %5 = arith.addf %2, %4 : vector<16x32xf32>
    %6 = math.tanh %5 : vector<16x32xf32>
    %7 = arith.truncf %6 : vector<16x32xf32> to vector<16x32xbf16>
    %c0_5 = arith.constant 0 : index
    %c0_6 = arith.constant 0 : index
    %8 = vector.load %arg5[%c0_5, %c0_6] : memref<32x32xbf16, #tpu.memory_space<vmem>>, vector<32x32xbf16>
    %cst_7 = arith.constant dense<0.000000e+00> : vector<16x32xf32>
    %9 = tpu.matmul %7, %8, %cst_7 {dimension_numbers = #tpu.dot_dimension_numbers<[1], [0], [0], [1], [0, 0, 1, 1], [], []>} : vector<16x32xbf16>, vector<32x32xbf16>, vector<16x32xf32> -> vector<16x32xf32>
    %c0_8 = arith.constant 0 : index
    %c0_9 = arith.constant 0 : index
    %10 = vector.load %arg6[%c0_8, %c0_9] : memref<1x32xf32, #tpu.memory_space<vmem>>, vector<1x32xf32>
    %11 = vector.broadcast %10 : vector<1x32xf32> to vector<16x32xf32>
    %12 = arith.addf %9, %11 : vector<16x32xf32>
    %13 = arith.negf %12 : vector<16x32xf32>
    %14 = math.exp %13 : vector<16x32xf32>
    %cst_10 = arith.constant 1.000000e+00 : f32
    %15 = vector.broadcast %cst_10 : f32 to vector<16x32xf32>
    %16 = arith.addf %15, %14 : vector<16x32xf32>
    %17 = arith.divf %15, %16 : vector<16x32xf32>
    %18 = arith.truncf %17 : vector<16x32xf32> to vector<16x32xbf16>
    %c0_11 = arith.constant 0 : index
    %c0_12 = arith.constant 0 : index
    %c0_13 = arith.constant 0 : index
    %19 = vector.load %arg7[%c0_11, %c0_12, %c0_13] : memref<1x32x64xbf16, #tpu.memory_space<vmem>>, vector<1x32x64xbf16>
    %20 = vector.shape_cast %19 : vector<1x32x64xbf16> to vector<32x64xbf16>
    %cst_14 = arith.constant dense<0.000000e+00> : vector<16x64xf32>
    %21 = tpu.matmul %18, %20, %cst_14 {dimension_numbers = #tpu.dot_dimension_numbers<[1], [0], [0], [1], [0, 0, 1, 1], [], []>} : vector<16x32xbf16>, vector<32x64xbf16>, vector<16x64xf32> -> vector<16x64xf32>
    %c0_15 = arith.constant 0 : index
    %c0_16 = arith.constant 0 : index
    %c0_17 = arith.constant 0 : index
    %22 = vector.load %arg8[%c0_15, %c0_16, %c0_17] : memref<1x1x64xf32, #tpu.memory_space<vmem>>, vector<1x1x64xf32>
    %23 = vector.shape_cast %22 : vector<1x1x64xf32> to vector<1x64xf32>
    %24 = vector.broadcast %23 : vector<1x64xf32> to vector<16x64xf32>
    %25 = arith.addf %21, %24 : vector<16x64xf32>
    %26 = math.tanh %25 : vector<16x64xf32>
    %27 = vector.extract_strided_slice %26 {offsets = [0, 0], sizes = [16, 32], strides = [1, 1]} : vector<16x64xf32> to vector<16x32xf32>
    %28 = vector.extract_strided_slice %26 {offsets = [0, 32], sizes = [16, 32], strides = [1, 1]} : vector<16x64xf32> to vector<16x32xf32>
    %29 = arith.truncf %27 : vector<16x32xf32> to vector<16x32xbf16>
    %c0_18 = arith.constant 0 : index
    %c0_19 = arith.constant 0 : index
    %30 = vector.load %arg9[%c0_18, %c0_19] : memref<32x32xbf16, #tpu.memory_space<vmem>>, vector<32x32xbf16>
    %cst_20 = arith.constant dense<0.000000e+00> : vector<16x32xf32>
    %31 = tpu.matmul %29, %30, %cst_20 {dimension_numbers = #tpu.dot_dimension_numbers<[1], [0], [0], [1], [0, 0, 1, 1], [], []>} : vector<16x32xbf16>, vector<32x32xbf16>, vector<16x32xf32> -> vector<16x32xf32>
    %c0_21 = arith.constant 0 : index
    %c0_22 = arith.constant 0 : index
    %32 = vector.load %arg10[%c0_21, %c0_22] : memref<1x32xf32, #tpu.memory_space<vmem>>, vector<1x32xf32>
    %33 = vector.broadcast %32 : vector<1x32xf32> to vector<16x32xf32>
    %34 = arith.addf %31, %33 : vector<16x32xf32>
    %35 = math.tanh %34 : vector<16x32xf32>
    %36 = arith.truncf %35 : vector<16x32xf32> to vector<16x32xbf16>
    %c0_23 = arith.constant 0 : index
    %c0_24 = arith.constant 0 : index
    %37 = vector.load %arg11[%c0_23, %c0_24] : memref<32x4xbf16, #tpu.memory_space<vmem>>, vector<32x4xbf16>
    %cst_25 = arith.constant dense<0.000000e+00> : vector<16x4xf32>
    %38 = tpu.matmul %36, %37, %cst_25 {dimension_numbers = #tpu.dot_dimension_numbers<[1], [0], [0], [1], [0, 0, 1, 1], [], []>} : vector<16x32xbf16>, vector<32x4xbf16>, vector<16x4xf32> -> vector<16x4xf32>
    %c0_26 = arith.constant 0 : index
    %c0_27 = arith.constant 0 : index
    %39 = vector.load %arg12[%c0_26, %c0_27] : memref<1x4xf32, #tpu.memory_space<vmem>>, vector<1x4xf32>
    %40 = vector.broadcast %39 : vector<1x4xf32> to vector<16x4xf32>
    %41 = arith.addf %38, %40 : vector<16x4xf32>
    %42 = arith.truncf %28 : vector<16x32xf32> to vector<16x32xbf16>
    %c0_28 = arith.constant 0 : index
    %c0_29 = arith.constant 0 : index
    %c0_30 = arith.constant 0 : index
    %43 = vector.load %arg13[%c0_28, %c0_29, %c0_30] : memref<1x32x32xbf16, #tpu.memory_space<vmem>>, vector<1x32x32xbf16>
    %44 = vector.shape_cast %43 : vector<1x32x32xbf16> to vector<32x32xbf16>
    %cst_31 = arith.constant dense<0.000000e+00> : vector<16x32xf32>
    %45 = tpu.matmul %42, %44, %cst_31 {dimension_numbers = #tpu.dot_dimension_numbers<[1], [0], [0], [1], [0, 0, 1, 1], [], []>} : vector<16x32xbf16>, vector<32x32xbf16>, vector<16x32xf32> -> vector<16x32xf32>
    %c0_32 = arith.constant 0 : index
    %c0_33 = arith.constant 0 : index
    %c0_34 = arith.constant 0 : index
    %46 = vector.load %arg14[%c0_32, %c0_33, %c0_34] : memref<1x1x32xf32, #tpu.memory_space<vmem>>, vector<1x1x32xf32>
    %47 = vector.shape_cast %46 : vector<1x1x32xf32> to vector<1x32xf32>
    %48 = vector.broadcast %47 : vector<1x32xf32> to vector<16x32xf32>
    %49 = arith.addf %45, %48 : vector<16x32xf32>
    %50 = math.tanh %49 : vector<16x32xf32>
    %51 = arith.truncf %50 : vector<16x32xf32> to vector<16x32xbf16>
    %c0_35 = arith.constant 0 : index
    %c0_36 = arith.constant 0 : index
    %c0_37 = arith.constant 0 : index
    %52 = vector.load %arg15[%c0_35, %c0_36, %c0_37] : memref<1x32x2xbf16, #tpu.memory_space<vmem>>, vector<1x32x2xbf16>
    %53 = vector.shape_cast %52 : vector<1x32x2xbf16> to vector<32x2xbf16>
    %cst_38 = arith.constant dense<0.000000e+00> : vector<16x2xf32>
    %54 = tpu.matmul %51, %53, %cst_38 {dimension_numbers = #tpu.dot_dimension_numbers<[1], [0], [0], [1], [0, 0, 1, 1], [], []>} : vector<16x32xbf16>, vector<32x2xbf16>, vector<16x2xf32> -> vector<16x2xf32>
    %c0_39 = arith.constant 0 : index
    %c0_40 = arith.constant 0 : index
    %c0_41 = arith.constant 0 : index
    %55 = vector.load %arg16[%c0_39, %c0_40, %c0_41] : memref<1x1x2xf32, #tpu.memory_space<vmem>>, vector<1x1x2xf32>
    %56 = vector.shape_cast %55 : vector<1x1x2xf32> to vector<1x2xf32>
    %57 = vector.broadcast %56 : vector<1x2xf32> to vector<16x2xf32>
    %58 = arith.addf %54, %57 : vector<16x2xf32>
    %cst_42 = arith.constant dense<0xFF800000> : vector<16xf32>
    %59 = vector.multi_reduction <maximumf>, %41, %cst_42 [1] : vector<16x4xf32> to vector<16xf32>
    %60 = vector.shape_cast %59 : vector<16xf32> to vector<16x1xf32>
    %61 = vector.broadcast %60 : vector<16x1xf32> to vector<16x4xf32>
    %62 = arith.subf %41, %61 : vector<16x4xf32>
    %63 = math.exp %62 : vector<16x4xf32>
    %cst_43 = arith.constant dense<0.000000e+00> : vector<16xf32>
    %64 = vector.multi_reduction <add>, %63, %cst_43 [1] : vector<16x4xf32> to vector<16xf32>
    %65 = vector.shape_cast %64 : vector<16xf32> to vector<16x1xf32>
    %66 = math.log %65 : vector<16x1xf32>
    %67 = vector.broadcast %66 : vector<16x1xf32> to vector<16x4xf32>
    %68 = arith.subf %62, %67 : vector<16x4xf32>
    %cst_44 = arith.constant dense<0xFF800000> : vector<16xf32>
    %69 = vector.multi_reduction <maximumf>, %58, %cst_44 [1] : vector<16x2xf32> to vector<16xf32>
    %70 = vector.shape_cast %69 : vector<16xf32> to vector<16x1xf32>
    %71 = vector.broadcast %70 : vector<16x1xf32> to vector<16x2xf32>
    %72 = arith.subf %58, %71 : vector<16x2xf32>
    %73 = math.exp %72 : vector<16x2xf32>
    %cst_45 = arith.constant dense<0.000000e+00> : vector<16xf32>
    %74 = vector.multi_reduction <add>, %73, %cst_45 [1] : vector<16x2xf32> to vector<16xf32>
    %75 = vector.shape_cast %74 : vector<16xf32> to vector<16x1xf32>
    %76 = math.log %75 : vector<16x1xf32>
    %77 = vector.broadcast %76 : vector<16x1xf32> to vector<16x2xf32>
    %78 = arith.subf %72, %77 : vector<16x2xf32>
    %cst_46 = arith.constant 0.000000e+00 : f32
    %79 = vector.broadcast %cst_46 : f32 to vector<16x122xf32>
    %80 = tpu.concatenate %68, %78, %79 in 1 : vector<16x4xf32>, vector<16x2xf32>, vector<16x122xf32> -> vector<16x128xf32>
    %c0_47 = arith.constant 0 : index
    %c0_48 = arith.constant 0 : index
    %81 = vector.load %arg17[%c0_47, %c0_48] : memref<16x128xf32, #tpu.memory_space<vmem>>, vector<16x128xf32>
    tpu.vector_store %arg17[%c0_47, %c0_48], %80 {strides = array<i32>} : memref<16x128xf32, #tpu.memory_space<vmem>>, vector<16x128xf32>,
    return
  }
  func.func @transform_0(%arg0: i32, %arg1: memref<1xi32, #tpu.memory_space<smem>>) -> (i32, i32) {
    %c0_i32 = arith.constant 0 : i32
    %c0_i32_0 = arith.constant 0 : i32
    return %arg0, %c0_i32 : i32, i32
  }
  func.func @transform_1(%arg0: i32, %arg1: memref<1xi32, #tpu.memory_space<smem>>) -> (i32, i32) {
    %c0_i32 = arith.constant 0 : i32
    %c0_i32_0 = arith.constant 0 : i32
    %c0_i32_1 = arith.constant 0 : i32
    return %c0_i32, %c0_i32_0 : i32, i32
  }
  func.func @transform_2(%arg0: i32, %arg1: memref<1xi32, #tpu.memory_space<smem>>) -> (i32, i32) {
    %c0_i32 = arith.constant 0 : i32
    %c0_i32_0 = arith.constant 0 : i32
    %c0_i32_1 = arith.constant 0 : i32
    return %c0_i32, %c0_i32_0 : i32, i32
  }
  func.func @transform_3(%arg0: i32, %arg1: memref<1xi32, #tpu.memory_space<smem>>) -> (i32, i32) {
    %c0_i32 = arith.constant 0 : i32
    %c0_i32_0 = arith.constant 0 : i32
    %c0_i32_1 = arith.constant 0 : i32
    return %c0_i32, %c0_i32_0 : i32, i32
  }
  func.func @transform_4(%arg0: i32, %arg1: memref<1xi32, #tpu.memory_space<smem>>) -> (i32, i32) {
    %c0_i32 = arith.constant 0 : i32
    %c0_i32_0 = arith.constant 0 : i32
    %c0_i32_1 = arith.constant 0 : i32
    return %c0_i32, %c0_i32_0 : i32, i32
  }
  func.func @transform_5(%arg0: i32, %arg1: memref<1xi32, #tpu.memory_space<smem>>) -> (i32, i32, i32) {
    %c0 = arith.constant 0 : index
    %0 = memref.load %arg1[%c0] : memref<1xi32, #tpu.memory_space<smem>>
    %c0_i32 = arith.constant 0 : i32
    %c0_i32_0 = arith.constant 0 : i32
    %c0_i32_1 = arith.constant 0 : i32
    return %0, %c0_i32, %c0_i32_0 : i32, i32, i32
  }
  func.func @transform_6(%arg0: i32, %arg1: memref<1xi32, #tpu.memory_space<smem>>) -> (i32, i32, i32) {
    %c0 = arith.constant 0 : index
    %0 = memref.load %arg1[%c0] : memref<1xi32, #tpu.memory_space<smem>>
    %c0_i32 = arith.constant 0 : i32
    %c0_i32_0 = arith.constant 0 : i32
    %c0_i32_1 = arith.constant 0 : i32
    return %0, %c0_i32, %c0_i32_0 : i32, i32, i32
  }
  func.func @transform_7(%arg0: i32, %arg1: memref<1xi32, #tpu.memory_space<smem>>) -> (i32, i32) {
    %c0_i32 = arith.constant 0 : i32
    %c0_i32_0 = arith.constant 0 : i32
    %c0_i32_1 = arith.constant 0 : i32
    return %c0_i32, %c0_i32_0 : i32, i32
  }
  func.func @transform_8(%arg0: i32, %arg1: memref<1xi32, #tpu.memory_space<smem>>) -> (i32, i32) {
    %c0_i32 = arith.constant 0 : i32
    %c0_i32_0 = arith.constant 0 : i32
    %c0_i32_1 = arith.constant 0 : i32
    return %c0_i32, %c0_i32_0 : i32, i32
  }
  func.func @transform_9(%arg0: i32, %arg1: memref<1xi32, #tpu.memory_space<smem>>) -> (i32, i32) {
    %c0_i32 = arith.constant 0 : i32
    %c0_i32_0 = arith.constant 0 : i32
    %c0_i32_1 = arith.constant 0 : i32
    return %c0_i32, %c0_i32_0 : i32, i32
  }
  func.func @transform_10(%arg0: i32, %arg1: memref<1xi32, #tpu.memory_space<smem>>) -> (i32, i32) {
    %c0_i32 = arith.constant 0 : i32
    %c0_i32_0 = arith.constant 0 : i32
    %c0_i32_1 = arith.constant 0 : i32
    return %c0_i32, %c0_i32_0 : i32, i32
  }
  func.func @transform_11(%arg0: i32, %arg1: memref<1xi32, #tpu.memory_space<smem>>) -> (i32, i32, i32) {
    %c0 = arith.constant 0 : index
    %0 = memref.load %arg1[%c0] : memref<1xi32, #tpu.memory_space<smem>>
    %c0_i32 = arith.constant 0 : i32
    %c0_i32_0 = arith.constant 0 : i32
    %c0_i32_1 = arith.constant 0 : i32
    return %0, %c0_i32, %c0_i32_0 : i32, i32, i32
  }
  func.func @transform_12(%arg0: i32, %arg1: memref<1xi32, #tpu.memory_space<smem>>) -> (i32, i32, i32) {
    %c0 = arith.constant 0 : index
    %0 = memref.load %arg1[%c0] : memref<1xi32, #tpu.memory_space<smem>>
    %c0_i32 = arith.constant 0 : i32
    %c0_i32_0 = arith.constant 0 : i32
    %c0_i32_1 = arith.constant 0 : i32
    return %0, %c0_i32, %c0_i32_0 : i32, i32, i32
  }
  func.func @transform_13(%arg0: i32, %arg1: memref<1xi32, #tpu.memory_space<smem>>) -> (i32, i32, i32) {
    %c0 = arith.constant 0 : index
    %0 = memref.load %arg1[%c0] : memref<1xi32, #tpu.memory_space<smem>>
    %c0_i32 = arith.constant 0 : i32
    %c0_i32_0 = arith.constant 0 : i32
    %c0_i32_1 = arith.constant 0 : i32
    return %0, %c0_i32, %c0_i32_0 : i32, i32, i32
  }
  func.func @transform_14(%arg0: i32, %arg1: memref<1xi32, #tpu.memory_space<smem>>) -> (i32, i32, i32) {
    %c0 = arith.constant 0 : index
    %0 = memref.load %arg1[%c0] : memref<1xi32, #tpu.memory_space<smem>>
    %c0_i32 = arith.constant 0 : i32
    %c0_i32_0 = arith.constant 0 : i32
    %c0_i32_1 = arith.constant 0 : i32
    return %0, %c0_i32, %c0_i32_0 : i32, i32, i32
  }
  func.func @transform_15(%arg0: i32, %arg1: memref<1xi32, #tpu.memory_space<smem>>) -> (i32, i32) {
    %c0_i32 = arith.constant 0 : i32
    %c0_i32_0 = arith.constant 0 : i32
    return %arg0, %c0_i32 : i32, i32
  }
}

</mosaic_0001>

<bundles_post_ra>
// kernel: mdan_forward.1
= control target key start
LH: loop header
LB: loop body
LE: loop exit
PB: predicated region body
PF: predicated region fallthrough
CT: control target
= control target key end

     0   :  { %s1427_s24 = smov 0   ;;  %s1535_s0 = inlined_call_operand.<no memory space> [shape: s32[1], index: 0, kind: input, shape index: {}]   ;;  %s1536_s1 = inlined_call_operand.vmem [shape: bf16[48,32], index: 1, kind: input, shape index: {}]   ;;  %s1537_s2 = inlined_call_operand.vmem [shape: bf16[32,32], index: 2, kind: input, shape index: {}]   ;;  %s1538_s3 = inlined_call_operand.vmem [shape: f32[1,32], index: 3, kind: input, shape index: {}]   ;;  %s1539_s4 = inlined_call_operand.vmem [shape: bf16[32,32], index: 4, kind: input, shape index: {}]   ;;  %s1540_s5 = inlined_call_operand.vmem [shape: f32[1,32], index: 5, kind: input, shape index: {}]   ;;  %s1541_s6 = inlined_call_operand.vmem [shape: bf16[3,32,64], index: 6, kind: input, shape index: {}]   ;;  %s1542_s7 = inlined_call_operand.vmem [shape: f32[3,1,64], index: 7, kind: input, shape index: {}]   ;;  %s1543_s8 = inlined_call_operand.vmem [shape: bf16[32,32], index: 8, kind: input, shape index: {}]   ;;  %s1544_s9 = inlined_call_operand.vmem [shape: f32[1,32], index: 9, kind: input, shape index: {}]   ;;  %s1545_s10 = inlined_call_operand.vmem [shape: bf16[32,4], index: 10, kind: input, shape index: {}]   ;;  %s1546_s11 = inlined_call_operand.vmem [shape: f32[1,4], index: 11, kind: input, shape index: {}]   ;;  %s1547_s12 = inlined_call_operand.vmem [shape: bf16[3,32,32], index: 12, kind: input, shape index: {}]   ;;  %s1548_s13 = inlined_call_operand.vmem [shape: f32[3,1,32], index: 13, kind: input, shape index: {}]   ;;  %s1549_s14 = inlined_call_operand.vmem [shape: bf16[3,32,2], index: 14, kind: input, shape index: {}]   ;;  %s1550_s15 = inlined_call_operand.vmem [shape: f32[3,1,2], index: 15, kind: input, shape index: {}]   ;;  %s1551_s16 = inlined_call_operand.vmem [shape: f32[48,128], index: 16, kind: output, shape index: {}]  }
   0x1   :  { %1552 = sst [smem:[#allocation4_spill]] %s1535_s0 }
   0x2   :  { %s1553_s23 = sld [smem:[#allocation4_spill]] }
   0x8   :  { %21 = sst [smem:[#allocation3]] %s1553_s23 }
   0x9 LB: > { %s1168_s25 = sadd.s32 4294967295, %s1335_s24   ;;  %p1172_p0 = scmp.ge.s32.totalorder %s1335_s24, 1  ;;  %s1335_s24 = sphi %s1427_s24, %s27_s24  }
   0xa   : > { %p518_p1 = scmp.lt.s32.totalorder %s1335_s24, 4 }
   0xc   : > { %p519_p2 = pnand %p1172_p0, %p518_p1 }
   0xd   : > { %s1173_s28 = sshll.u32 (!%p519_p2), %s1168_s25, 1  ;;  %s602_s27 = sld [smem:[#allocation3]] (!%p519_p2) }
   0xe   : > { %522 = sbr.rel (%p519_p2) target bundleno = 1265 (0x4f1), region = 80  ;;  %p597_p3 = scmp.lt.s32.totalorder (!%p519_p2), %s1173_s28, 5 }
   0xf   : > { %s1337_s22 = smov (!%p519_p2), 96  }
  0x13   : > { %v1259_v0 = vld [vmem:[%s1537_s2 + $0x8] sm:$0xff]  ;;  %v1258_v1 = vld [vmem:[%s1537_s2] sm:$0xff]  ;;  %s1555_s28 = smov (!%p597_p3, %s1173_s28), 5  ;;  %vm672_vm0 = vcmask 261120   ;;  %p603_p4 = scmp.lt.s32.totalorder %s602_s27, 2  ;;  %vm966_vm9 = vcmask 31744  }
  0x14   : > { %682 = vmatpush.bf16.msra.mxu0 %v1259_v0  ;;  %s1174_s0 = sshll.u32 %s1555_s28, 2  ;;  %v1261_v3 = vld [vmem:[%s1539_s4 + $0x8] sm:$0xff]  ;;  %v1260_v4 = vld [vmem:[%s1539_s4] sm:$0xff]  ;;  %vm991_vm10 = vcmask 15360   ;;  %vm1026_vm11 = vcmask 48128  }
  0x15   : > { %s600_s19 = scalar_lea.vmem %s1536_s1, %s1174_s0  ;;  %722 = vmatpush.bf16.msra.mxu1 %v1261_v3  ;;  %v1282_v6 = vld [vmem:[%s1538_s3] ss:$0 sm:$0xff]  ;;  %s1557_s27 = smov (!%p603_p4, %s602_s27), 2  ;;  %v1265_v47 = vld [vmem:[%s1543_s8 + $0x8] sm:$0xff] }
  0x16   : > { %v1257_v2 = vld [vmem:[%s600_s19] sm:$0xff]  ;;  %s612_s0 = scalar_lea.vmem %s1542_s7, %s1557_s27  ;;  %s1465_s17 = sshll.u32 %s1557_s27, 4  ;;  %838 = vmatpush.bf16.msra.mxu3 %v1265_v47  ;;  %v1267_v59 = vld [vmem:[%s1545_s10 + $0x8] sm:$0xff] }
  0x17   : > { %s607_s20 = scalar_lea.vmem %s1541_s6, %s1465_s17  ;;  %v1283_v13 = vld [vmem:[%s1540_s5] ss:$0 sm:$0xff]  ;;  %s619_s19 = scalar_lea.vmem %s1547_s12, %s1465_s17 }
  0x18   : > { %683 = vmatpush.bf16.msra.mxu0 %v1258_v1  ;;  %v1263_v14 = vld [vmem:[%s607_s20 + $0x8] sm:$0xff]  ;;  %v1262_v15 = vld [vmem:[%s607_s20] sm:$0xff]  ;;  %s624_s26 = scalar_lea.vmem %s1548_s13, %s1557_s27  ;;  %s636_s23 = scalar_lea.vmem %s1550_s15, %s1557_s27 }
  0x19   : > { %723 = vmatpush.bf16.msra.mxu1 %v1260_v4  ;;  %798 = vmatpush.bf16.msra.mxu2 %v1263_v14  ;;  %v1264_v48 = vld [vmem:[%s1543_s8] sm:$0xff]  ;;  %v1269_v49 = vld [vmem:[%s619_s19 + $0x8] sm:$0xff]  ;;  %s631_s30 = scalar_lea.vmem %s1549_s14, %s1465_s17  ;;  %s1338_s17 = smov 4  }
  0x1a   : > { %839 = vmatpush.bf16.msra.mxu3 %v1264_v48  ;;  %v1268_v50 = vld [vmem:[%s619_s19] sm:$0xff] }
  0x1b   : > { %1195 = vmatmul.msk.bf16.vlgmr.msra.gmra.mxu0 %vm672_vm0, %v1257_v2  ;;  %v1284_v52 = vld [vmem:[%s612_s0] ss:$0 sm:$0xff] }
  0x1c   : > { %878 = vmatpush.bf16.msrb.mxu0 %v1267_v59  ;;  %v1266_v60 = vld [vmem:[%s1545_s10] sm:$0xff] }
  0x1d   : > { %799 = vmatpush.bf16.msra.mxu2 %v1262_v15  ;;  %918 = vmatpush.bf16.msrb.mxu1 %v1269_v49  ;;  %v1285_v63 = vld [vmem:[%s1544_s9] ss:$0 sm:$0xff] }
  0x20   : > { %879 = vmatpush.bf16.msrb.mxu0 %v1266_v60 }
  0x21   : > { %919 = vmatpush.bf16.msrb.mxu1 %v1268_v50 }
  0x98   : > { %v685_v5 = vpop.f32.mrf.mxu0 }
  0x99   : > { %v686_v7 = vadd.f32 %v1282_v6, %v685_v5 }
  0x9b   : > { %1289 = vtanh.f32 %v686_v7  ;;  %v1270_v7 = vld [vmem:[%s631_s30] sm:$0xff] }
  0xa0   : > { %v687_v8 = vpop.f32.mrf.mxu0 }
  0xa1   : > { %v688_v9 = vadd.f32 %v1282_v6, %v687_v8  ;;  %v1290_v10 = vpop.eup %1289  ;;  %v1271_v6 = vld [vmem:[%s631_s30 + $0x8] sm:$0xff] }
  0xa2   : > { %958 = vmatpush.bf16.msrb.mxu2 %v1271_v6 }
  0xa3   : > { %1291 = vtanh.f32 %v688_v9  ;;  %v1286_v9 = vld [vmem:[%s624_s26] ss:$0 sm:$0xff]  ;;  %s1182_s26 = sshll.u32 %s1555_s28, 3 }
  0xa4   : > { %s642_s20 = scalar_lea.vmem %s1551_s16, %s1182_s26 }
  0xa6   : > { %959 = vmatpush.bf16.msrb.mxu2 %v1270_v7 }
  0xa9   : > { %v1292_v11 = vpop.eup %1291 }
  0xaa   : > { %v692_v12 = vpack.c.bf16 %v1292_v11, %v1290_v10 }
  0xac   : > { %1204 = vmatmul.msk.bf16.vlgmr.msra.gmra.mxu1 %vm672_vm0, %v692_v12 }
 0x129   : > { %v725_v16 = vpop.f32.mrf.mxu1 }
 0x12a   : > { %v726_v17 = vadd.f32 %v1283_v13, %v725_v16  ;;  %v1287_v16 = vld [vmem:[%s1546_s11] ss:$0 sm:$0xff] }
 0x12c   : > { %v1205_v18 = vmul.f32 -1.442695, %v726_v17 }
 0x12e   : > { %1293 = vpow2.f32 %v1205_v18 }
 0x131   : > { %v727_v19 = vpop.f32.mrf.mxu1 }
 0x132   : > { %v728_v20 = vadd.f32 %v1283_v13, %v727_v19 }
 0x134   : > { %v1294_v21 = vpop.eup %1293  ;;  %v1206_v22 = vmul.f32 -1.442695, %v728_v20 }
 0x135   : > { %v736_v23 = vadd.f32 1.0, %v1294_v21 }
 0x136   : > { %1295 = vpow2.f32 %v1206_v22  ;;  %v1288_v22 = vld [vmem:[%s636_s23] ss:$0 sm:$0xff] }
 0x137   : > { %1297 = vrcp.f32 %v736_v23  ;;  %vm743_vm2 = vweird.f32 %v736_v23  ;;  %v749_v34 = vand.u32 2147483648, %v736_v23  ;;  %v747_v36 = vand.u32 2147483647, %v736_v23 }
 0x139   : > { %v750_v41 = vor.u32 1.1754944e-38, %v749_v34  ;;  %vm748_vm7 = vcmp.eq.f32.partialorder %v747_v36, 8.507059e+37 }
 0x13c   : > { %v1296_v24 = vpop.eup %1295 }
 0x13d   : > { %v1298_v25 = vpop.eup %1297  ;;  %v737_v26 = vadd.f32 1.0, %v1296_v24 }
 0x13e   : > { %v739_v27 = vmul.f32 %v1298_v25, %v736_v23  ;;  %vm744_vm1 = vweird.f32 %v1298_v25 }
 0x13f   : > { %1299 = vrcp.f32 %v737_v26  ;;  %v764_v35 = vand.u32 2147483648, %v737_v26  ;;  %v762_v38 = vand.u32 2147483647, %v737_v26  ;;  %vm745_vm4 = vmor %vm743_vm2, %vm744_vm1  ;;  %vm758_vm5 = vweird.f32 %v737_v26 }
 0x140   : > { %v740_v28 = vsub.f32 1.0, %v739_v27 }
 0x141   : > { %v765_v42 = vor.u32 1.1754944e-38, %v764_v35  ;;  %vm763_vm8 = vcmp.eq.f32.partialorder %v762_v38, 8.507059e+37 }
 0x142   : > { %v741_v29 = vmul.f32 %v1298_v25, %v740_v28 }
 0x144   : > { %v742_v32 = vadd.f32 %v1298_v25, %v741_v29 }
 0x145   : > { %v1300_v30 = vpop.eup %1299 }
 0x146   : > { %v754_v31 = vmul.f32 %v1300_v30, %v737_v26  ;;  %vm759_vm3 = vweird.f32 %v1300_v30  ;;  %v746_v39 = vsel %vm745_vm4, %v1298_v25, %v742_v32 }
 0x147   : > { %vm760_vm6 = vmor %vm758_vm5, %vm759_vm3  ;;  %v751_v44 = vsel %vm748_vm7, %v750_v41, %v746_v39 }
 0x148   : > { %v755_v33 = vsub.f32 1.0, %v754_v31 }
 0x14a   : > { %v756_v37 = vmul.f32 %v1300_v30, %v755_v33 }
 0x14c   : > { %v757_v40 = vadd.f32 %v1300_v30, %v756_v37 }
 0x14e   : > { %v761_v43 = vsel %vm760_vm6, %v1300_v30, %v757_v40 }
 0x14f   : > { %v766_v45 = vsel %vm763_vm8, %v765_v42, %v761_v43 }
 0x150   : > { %v768_v46 = vpack.c.bf16 %v766_v45, %v751_v44 }
 0x152   : > { %1215 = vmatmul.msk.bf16.vlgmr.msra.gmra.mxu2 %vm672_vm0, %v768_v46 }
 0x1d5   : > { %v801_v51 = vpop.f32.mrf.mxu2 }
 0x1d6   : > { %v802_v53 = vadd.f32 %v1284_v52, %v801_v51 }
 0x1d8   : > { %1301 = vtanh.f32 %v802_v53 }
 0x1dd   : > { %v803_v54 = vpop.f32.mrf.mxu2 }
 0x1de   : > { %v804_v55 = vadd.f32 %v1284_v52, %v803_v54  ;;  %v1302_v56 = vpop.eup %1301 }
 0x1e0   : > { %1303 = vtanh.f32 %v804_v55 }
 0x1e6   : > { %v1304_v57 = vpop.eup %1303 }
 0x1e7   : > { %v808_v58 = vpack.c.bf16 %v1304_v57, %v1302_v56 }
 0x1e9   : > { %895 = vrot.lane.b32.xlu0 %v808_v58, %s1337_s22  ;;  %1224 = vmatmul.msk.bf16.vlgmr.msra.gmra.mxu3 %vm672_vm0, %v808_v58 }
 0x25b   : > { %v896_v61 = vpop.permute.xlu0 %895 }
 0x25c   : > { %1242 = vmatmul.msk.bf16.vlgmr.msrb.gmra.mxu1 %vm672_vm0, %v896_v61 }
 0x26c   : > { %v841_v62 = vpop.f32.mrf.mxu3 }
 0x26d   : > { %v842_v0 = vadd.f32 %v1285_v63, %v841_v62 }
 0x26f   : > { %1305 = vtanh.f32 %v842_v0 }
 0x274   : > { %v843_v1 = vpop.f32.mrf.mxu3 }
 0x275   : > { %v844_v2 = vadd.f32 %v1285_v63, %v843_v1  ;;  %v1306_v3 = vpop.eup %1305 }
 0x277   : > { %1307 = vtanh.f32 %v844_v2 }
 0x27d   : > { %v1308_v4 = vpop.eup %1307 }
 0x27e   : > { %v848_v5 = vpack.c.bf16 %v1308_v4, %v1306_v3 }
 0x280   : > { %1233 = vmatmul.msk.bf16.vlgmr.msrb.gmra.mxu0 %vm672_vm0, %v848_v5 }
 0x2d9   : > { %v921_v8 = vpop.f32.mrf.mxu1 }
 0x2da   : > { %v922_v10 = vadd.f32 %v1286_v9, %v921_v8 }
 0x2dc   : > { %1309 = vtanh.f32 %v922_v10 }
 0x2e1   : > { %v923_v11 = vpop.f32.mrf.mxu1 }
 0x2e2   : > { %v924_v12 = vadd.f32 %v1286_v9, %v923_v11  ;;  %v1310_v13 = vpop.eup %1309 }
 0x2e4   : > { %1311 = vtanh.f32 %v924_v12 }
 0x2ea   : > { %v1312_v14 = vpop.eup %1311 }
 0x2eb   : > { %v928_v15 = vpack.c.bf16 %v1312_v14, %v1310_v13 }
 0x2ed   : > { %1251 = vmatmul.msk.bf16.vlgmr.msrb.gmra.mxu2 %vm672_vm0, %v928_v15 }
 0x2fd   : > { %v881_v17 = vpop.f32.mrf.mxu0 }
 0x2fe   : > { %v882_v18 = vadd.f32 %v1287_v16, %v881_v17 }
 0x300   : > { %v967_v29 = vsel %vm966_vm9, %v882_v18, -inf }
 0x305   : > { %v883_v19 = vpop.f32.mrf.mxu0 }
 0x306   : > { %v884_v20 = vadd.f32 %v1287_v16, %v883_v19 }
 0x308   : > { %v970_v21 = vsel %vm966_vm9, %v884_v20, -inf }
 0x309   : > { %971 = vmax.xlane.f32.xlu2 %v970_v21 }
 0x370   : > { %v961_v23 = vpop.f32.mrf.mxu2 }
 0x371   : > { %v962_v24 = vadd.f32 %v1288_v22, %v961_v23 }
 0x373   : > { %v992_v25 = vsel %vm991_vm10, %v962_v24, -inf }
 0x374   : > { %993 = vmax.xlane.f32.xlu0 %v992_v25 }
 0x378   : > { %v963_v26 = vpop.f32.mrf.mxu2 }
 0x379   : > { %v964_v27 = vadd.f32 %v1288_v22, %v963_v26 }
 0x37b   : > { %v995_v28 = vsel %vm991_vm10, %v964_v27, -inf }
 0x37c   : > { %996 = vmax.xlane.f32.xlu1 %v995_v28  ;;  %v972_v33 = vpop.xlane.xlu2 %971 }
 0x37d   : > { %v974_v37 = vsub.f32 %v884_v20, %v972_v33 }
 0x37f   : > { %v977_v40 = vmul.f32 1.442695, %v974_v37 }
 0x384   : > { %968 = vmax.xlane.f32.xlu1 %v967_v29 }
 0x3e7   : > { %v994_v30 = vpop.xlane.xlu0 %993 }
 0x3e8   : > { %v998_v31 = vsub.f32 %v962_v24, %v994_v30 }
 0x3ea   : > { %v1000_v32 = vmul.f32 1.442695, %v998_v31 }
 0x3ec   : > { %1313 = vpow2.f32 %v1000_v32 }
 0x3ef   : > { %v997_v34 = vpop.xlane.xlu1 %996 }
 0x3f0   : > { %v999_v35 = vsub.f32 %v964_v27, %v997_v34 }
 0x3f2   : > { %v1314_v36 = vpop.eup %1313  ;;  %v1002_v38 = vmul.f32 1.442695, %v999_v35 }
 0x3f3   : > { %v1004_v39 = vsel %vm991_vm10, %v1314_v36, 0.0 }
 0x3f4   : > { %1315 = vpow2.f32 %v1002_v38  ;;  %1005 = vadd.xlane.f32.xlu2 %v1004_v39 }
 0x3f5   : > { %1317 = vpow2.f32 %v977_v40 }
 0x3f7   : > { %v969_v41 = vpop.xlane.xlu1 %968 }
 0x3f8   : > { %v973_v42 = vsub.f32 %v882_v18, %v969_v41 }
 0x3fa   : > { %v1316_v43 = vpop.eup %1315  ;;  %v975_v44 = vmul.f32 1.442695, %v973_v42 }
 0x3fb   : > { %v1007_v45 = vsel %vm991_vm10, %v1316_v43, 0.0  ;;  %v1318_v46 = vpop.eup %1317 }
 0x3fc   : > { %1319 = vpow2.f32 %v975_v44  ;;  %1008 = vadd.xlane.f32.xlu1 %v1007_v45  ;;  %v982_v48 = vsel %vm966_vm9, %v1318_v46, 0.0 }
 0x402   : > { %v1320_v47 = vpop.eup %1319 }
 0x403   : > { %v979_v49 = vsel %vm966_vm9, %v1320_v47, 0.0 }
 0x404   : > { %983 = vadd.xlane.f32.xlu1 %v982_v48  ;;  %980 = vadd.xlane.f32.xlu2 %v979_v49 }
 0x467   : > { %v1006_v50 = vpop.xlane.xlu2 %1005 }
 0x468   : > { %1321 = vlog2.f32 %v1006_v50 }
 0x46e   : > { %v1322_v51 = vpop.eup %1321 }
 0x46f   : > { %v1011_v52 = vmul.f32 0.6931472, %v1322_v51  ;;  %v1009_v53 = vpop.xlane.xlu1 %1008 }
 0x470   : > { %1323 = vlog2.f32 %v1009_v53 }
 0x471   : > { %v1014_v54 = vsub.f32 %v998_v31, %v1011_v52 }
 0x473   : > { %1018 = vrot.lane.b32.xlu2 %v1014_v54, %s1338_s17 }
 0x476   : > { %v1324_v55 = vpop.eup %1323 }
 0x477   : > { %v1013_v56 = vmul.f32 0.6931472, %v1324_v55  ;;  %v981_v58 = vpop.xlane.xlu2 %980  ;;  %v984_v1 = vpop.xlane.xlu1 %983 }
 0x478   : > { %1325 = vlog2.f32 %v981_v58 }
 0x479   : > { %v1015_v57 = vsub.f32 %v999_v35, %v1013_v56  ;;  %1327 = vlog2.f32 %v984_v1 }
 0x47b   : > { %1020 = vrot.lane.b32.xlu1 %v1015_v57, %s1338_s17 }
 0x47e   : > { %v1326_v59 = vpop.eup %1325 }
 0x47f   : > { %v986_v60 = vmul.f32 0.6931472, %v1326_v59  ;;  %v1328_v2 = vpop.eup %1327 }
 0x480   : > { %v988_v3 = vmul.f32 0.6931472, %v1328_v2 }
 0x481   : > { %v989_v61 = vsub.f32 %v973_v42, %v986_v60 }
 0x482   : > { %v990_v4 = vsub.f32 %v974_v37, %v988_v3 }
 0x4cd   : > { %v1019_v62 = vpop.permute.xlu2 %1018 }
 0x4ce   : > { %v1024_v63 = vsel %vm966_vm9, %v989_v61, %v1019_v62 }
 0x4cf   : > { %v1027_v0 = vsel %vm1026_vm11, %v1024_v63, 0.0 }
 0x4d0   : > { %1029 = vst [vmem:[%s642_s20] sm:$0xff] %v1027_v0 }
 0x4ed   : > { %v1021_v5 = vpop.permute.xlu1 %1020 }
 0x4ee   : > { %v1025_v6 = vsel %vm966_vm9, %v990_v4, %v1021_v5 }
 0x4ef   : > { %v1028_v7 = vsel %vm1026_vm11, %v1025_v6, 0.0 }
 0x4f0   : > { %1030 = vst [vmem:[%s642_s20 + $0x8] sm:$0xff] %v1028_v7 }
 0x4f1 PF: > { %s27_s24 = sadd.s32 1, %s1335_s24  }
 0x4f2   : > { %p24_p5 = scmp.ge.s32.totalorder %s27_s24, 5  }
 0x4f4   :  { %26 = sbr.rel (!%p24_p5) target bundleno = 9 (0x9), region = 128 }

</bundles_post_ra>
